<compile_context>
chip_gen: v6e
topology: v6e:2x2x1
jax: 0.10.0
libtpu: 0.0.40
codegen_flags: <defaults>
</compile_context>

<pallas_src>
import functools

import jax
import jax.numpy as jnp
from jax.experimental import pallas as pl
from jax.experimental.pallas import tpu as pltpu


# ------------------------------- kernels -----------------------------------

def _convt_stats_kernel(patches_ref, w_ref, b_ref, y_ref, mu_ref, m2_ref):
    """Pass 1: sub-pixel transposed-conv matmul + bias, plus per-tile BN partials.

    patches_ref: (4*Cin, TM)     x and its (+w,+h,+hw) shifts on sublanes, M on lanes
    w_ref:       (4*Cout, 4*Cin) packed sub-pixel weights
    b_ref:       (4*Cout, 1)     bias broadcast over parity classes
    y_ref:       (4*Cout, TM)    pre-BN conv output tile (lane-dense)
    mu_ref:      (1, 4*Cout, 1)  per-row mean over this tile
    m2_ref:      (1, 4*Cout, 1)  per-row centered sum of squares over this tile
    """
    y = jnp.dot(w_ref[...], patches_ref[...], preferred_element_type=jnp.float32)
    y = y + b_ref[...]
    y_ref[...] = y
    mu = jnp.mean(y, axis=-1, keepdims=True)           # (4*Cout, 1), XLU lane reduce
    d = y - mu
    m2 = jnp.sum(d * d, axis=-1, keepdims=True)        # centered -> Chan-style merge
    mu_ref[...] = mu[None]
    m2_ref[...] = m2[None]


def _bn_relu_kernel(y_ref, scale_ref, shift_ref, out_ref):
    """Pass 2: fused BatchNorm affine (scale/shift fold gamma, beta, mean, var) + ReLU."""
    out_ref[...] = jnp.maximum(y_ref[...] * scale_ref[...] + shift_ref[...], 0.0)


# ------------------------------- wrapper ------------------------------------

def _shifted(x, dh, dw):
    # x[:, :, h+dh, w+dw] with zeros when out of range (bottom / right border).
    H, W = x.shape[2], x.shape[3]
    xp = jnp.pad(x, ((0, 0), (0, 0), (0, dh), (0, dw)))
    return xp[:, :, dh:dh + H, dw:dw + W]


def _build_wmat(conv_w):
    """conv_w: ConvTranspose2d weight, shape (Cin, Cout, 3, 3).

    Returns (4*Cout, 4*Cin): row p*Cout+co, p = 2*(ho%2)+(wo%2); column s*Cin+ci,
    s indexes the input shift {(0,0),(0,1),(1,0),(1,1)}.
    """
    Cin, Cout = conv_w.shape[0], conv_w.shape[1]
    z = jnp.zeros((Cout, Cin), conv_w.dtype)

    def wk(kh, kw):                       # (Cout, Cin)
        return conv_w[:, :, kh, kw].T

    blocks = [
        [wk(1, 1), z,        z,        z       ],   # ho even, wo even
        [wk(1, 2), wk(1, 0), z,        z       ],   # ho even, wo odd
        [wk(2, 1), z,        wk(0, 1), z       ],   # ho odd,  wo even
        [wk(2, 2), wk(2, 0), wk(0, 2), wk(0, 0)],   # ho odd,  wo odd
    ]
    return jnp.concatenate([jnp.concatenate(row, axis=1) for row in blocks], axis=0)


def _pick_tile(M, block_m):
    for t in (block_m, 2048, 1024, 512, 256, 128):
        if 0 < t <= M and M % t == 0 and t % 128 == 0:
            return t
    return M   # ragged fallback: single full-width block (full dims are always legal)


@functools.partial(jax.jit, static_argnames=("block_m",))
def upsampler_block(x_nchw, conv_w, conv_b, gamma, beta, *, block_m=512):
    """x_nchw: (N, Cin, H, W) f32.  conv_w: (Cin, Cout, 3, 3) (PyTorch ConvTranspose2d
    layout).  Returns (N, Cout, 2H, 2W) f32."""
    N, Cin, H, W = x_nchw.shape
    Cout = conv_w.shape[1]
    M = N * H * W
    tm = _pick_tile(M, block_m)
    num_tiles = M // tm
    eps = 1e-3

    # ---- glue (plain JAX): layout conversion + weight repacking ----
    # TODO(synk): the 4 shifted input copies re-read x ~4x from HBM; they could be
    # fused into the kernel with halo tiles + lane rolls to cut input traffic further.
    cols = []
    for dh, dw in ((0, 0), (0, 1), (1, 0), (1, 1)):
        xs = _shifted(x_nchw, dh, dw)                               # (N, Cin, H, W)
        cols.append(jnp.transpose(xs, (1, 0, 2, 3)).reshape(Cin, M))
    patches = jnp.concatenate(cols, axis=0)                         # (4*Cin, M)

    w_mat = _build_wmat(conv_w)                                     # (4*Cout, 4*Cin)
    b_rows = jnp.tile(conv_b, 4).reshape(4 * Cout, 1)               # (4*Cout, 1)

    # ---- pass 1: transposed conv (sub-pixel matmul) + per-tile BN partials ----
    y_flat, mu_p, m2_p = pl.pallas_call(
        _convt_stats_kernel,
        grid=(num_tiles,),
        in_specs=[
            pl.BlockSpec((4 * Cin, tm), lambda i: (0, i)),
            pl.BlockSpec((4 * Cout, 4 * Cin), lambda i: (0, 0)),
            pl.BlockSpec((4 * Cout, 1), lambda i: (0, 0)),
        ],
        out_specs=[
            pl.BlockSpec((4 * Cout, tm), lambda i: (0, i)),
            pl.BlockSpec((1, 4 * Cout, 1), lambda i: (i, 0, 0)),
            pl.BlockSpec((1, 4 * Cout, 1), lambda i: (i, 0, 0)),
        ],
        out_shape=[
            jax.ShapeDtypeStruct((4 * Cout, M), jnp.float32),
            jax.ShapeDtypeStruct((num_tiles, 4 * Cout, 1), jnp.float32),
            jax.ShapeDtypeStruct((num_tiles, 4 * Cout, 1), jnp.float32),
        ],
        compiler_params=pltpu.CompilerParams(dimension_semantics=("parallel",)),
    )(patches, w_mat, b_rows)

    # ---- tiny cross-tile / cross-parity stat merge in plain JAX (Chan merge) ----
    mu_g = mu_p.reshape(num_tiles, 4, Cout)          # group means, count = tm each
    m2_g = m2_p.reshape(num_tiles, 4, Cout)
    n_groups = 4 * num_tiles                         # total count = 4*M = N*2H*2W
    mean_c = jnp.mean(mu_g, axis=(0, 1))                                   # (Cout,)
    var_c = (jnp.sum(m2_g, axis=(0, 1))
             + tm * jnp.sum((mu_g - mean_c) ** 2, axis=(0, 1))) / (n_groups * tm)
    inv_c = jax.lax.rsqrt(var_c + eps)
    scale_c = gamma * inv_c
    shift_c = beta - mean_c * scale_c
    scale_rows = jnp.tile(scale_c, 4).reshape(4 * Cout, 1)
    shift_rows = jnp.tile(shift_c, 4).reshape(4 * Cout, 1)

    # ---- pass 2: fused batch-norm affine + ReLU (lane-dense stores) ----
    out_flat = pl.pallas_call(
        _bn_relu_kernel,
        grid=(num_tiles,),
        in_specs=[
            pl.BlockSpec((4 * Cout, tm), lambda i: (0, i)),
            pl.BlockSpec((4 * Cout, 1), lambda i: (0, 0)),
            pl.BlockSpec((4 * Cout, 1), lambda i: (0, 0)),
        ],
        out_specs=pl.BlockSpec((4 * Cout, tm), lambda i: (0, i)),
        out_shape=jax.ShapeDtypeStruct((4 * Cout, M), jnp.float32),
        compiler_params=pltpu.CompilerParams(dimension_semantics=("parallel",)),
    )(y_flat, scale_rows, shift_rows)

    # ---- glue: sub-pixel reassembly back to NCHW (pure reshape/transpose) ----
    out6 = out_flat.reshape(2, 2, Cout, N, H, W)          # (ph, pw, co, n, h, w)
    return jnp.transpose(out6, (3, 2, 4, 0, 5, 1)).reshape(N, Cout, 2 * H, 2 * W)


# ------------------------------ reference -----------------------------------

def reference(x, conv_w, conv_b, gamma, beta, eps=1e-3):
    """Pure-JAX reference matching the PyTorch training-mode forward."""
    w_oihw = jnp.transpose(jnp.flip(conv_w, axis=(2, 3)), (1, 0, 2, 3))
    conv = jax.lax.conv_general_dilated(
        x, w_oihw, window_strides=(1, 1), padding=((1, 2), (1, 2)),
        lhs_dilation=(2, 2), dimension_numbers=("NCHW", "OIHW", "NCHW"))
    conv = conv + conv_b[None, :, None, None]
    mean = jnp.mean(conv, axis=(0, 2, 3), keepdims=True)
    var = jnp.mean((conv - mean) ** 2, axis=(0, 2, 3), keepdims=True)
    y = (conv - mean) * jax.lax.rsqrt(var + eps)
    y = y * gamma[None, :, None, None] + beta[None, :, None, None]
    return jnp.maximum(y, 0.0)


if __name__ == "__main__":
    key = jax.random.PRNGKey(0)
    k1, k2, k3, k4, k5 = jax.random.split(key, 5)

    N, Cin, H, W = 2, 4, 16, 16
    Cout = 8

    x = jax.random.normal(k1, (N, Cin, H, W), jnp.float32)
    # PyTorch ConvTranspose2d weight layout: (in_channels, out_channels, kH, kW)
    conv_w = 0.1 * jax.random.normal(k2, (Cin, Cout, 3, 3), jnp.float32)
    conv_b = 0.1 * jax.random.normal(k3, (Cout,), jnp.float32)
    gamma = 1.0 + 0.1 * jax.random.normal(k4, (Cout,), jnp.float32)
    beta = 0.1 * jax.random.normal(k5, (Cout,), jnp.float32)

    # block_m=128 -> 4 M-tiles at this toy size, so the grid + stat merge are exercised.
    out = upsampler_block(x, conv_w, conv_b, gamma, beta, block_m=128)
    out = jax.block_until_ready(out)

    ref = reference(x, conv_w, conv_b, gamma, beta)
    assert out.shape == (N, Cout, 2 * H, 2 * W), out.shape
    err = float(jnp.max(jnp.abs(out - ref)))
    assert jnp.allclose(out, ref, atol=1e-4, rtol=1e-4), err
    print("KERNEL_OK")
</pallas_src>

<mosaic_0001>
module attributes {stable_mosaic.version = 11 : i64} {
  func.func @_convt_stats_kernel(%arg0: i32, %arg1: memref<16x128xf32, #tpu.memory_space<vmem>>, %arg2: memref<32x16xf32, #tpu.memory_space<vmem>>, %arg3: memref<32x1xf32, #tpu.memory_space<vmem>>, %arg4: memref<32x128xf32, #tpu.memory_space<vmem>>, %arg5: memref<1x32x1xf32, #tpu.memory_space<vmem>>, %arg6: memref<1x32x1xf32, #tpu.memory_space<vmem>>) attributes {dimension_semantics = [#tpu.dimension_semantics<parallel>], iteration_bounds = array<i64: 4>, scalar_prefetch = 0 : i64, scratch_operands = 0 : i64, tpu.core_type = #tpu.core_type<tc>, window_params = [{transform_indices = @transform_0, window_bounds = array<i64: 16, 128>}, {pipeline_mode = #tpu.pipeline_mode<synchronous>, transform_indices = @transform_1, window_bounds = array<i64: 32, 16>}, {pipeline_mode = #tpu.pipeline_mode<synchronous>, transform_indices = @transform_2, window_bounds = array<i64: 32, 1>}, {transform_indices = @transform_3, window_bounds = array<i64: 32, 128>}, {transform_indices = @transform_4, window_bounds = array<i64: 1, 32, 1>}, {transform_indices = @transform_5, window_bounds = array<i64: 1, 32, 1>}]} {
    %c0 = arith.constant 0 : index
    %c0_0 = arith.constant 0 : index
    %0 = vector.load %arg2[%c0, %c0_0] : memref<32x16xf32, #tpu.memory_space<vmem>>, vector<32x16xf32>
    %c0_1 = arith.constant 0 : index
    %c0_2 = arith.constant 0 : index
    %1 = vector.load %arg1[%c0_1, %c0_2] : memref<16x128xf32, #tpu.memory_space<vmem>>, vector<16x128xf32>
    %cst = arith.constant dense<0.000000e+00> : vector<32x128xf32>
    %2 = tpu.matmul %0, %1, %cst {dimension_numbers = #tpu.dot_dimension_numbers<[1], [0], [0], [1], [0, 0, 1, 1], [], []>} : vector<32x16xf32>, vector<16x128xf32>, vector<32x128xf32> -> vector<32x128xf32>
    %c0_3 = arith.constant 0 : index
    %c0_4 = arith.constant 0 : index
    %3 = vector.load %arg3[%c0_3, %c0_4] : memref<32x1xf32, #tpu.memory_space<vmem>>, vector<32x1xf32>
    %4 = vector.broadcast %3 : vector<32x1xf32> to vector<32x128xf32>
    %5 = arith.addf %2, %4 : vector<32x128xf32>
    %c0_5 = arith.constant 0 : index
    %c0_6 = arith.constant 0 : index
    %6 = vector.load %arg4[%c0_5, %c0_6] : memref<32x128xf32, #tpu.memory_space<vmem>>, vector<32x128xf32>
    tpu.vector_store %arg4[%c0_5, %c0_6], %5 {strides = array<i32>} : memref<32x128xf32, #tpu.memory_space<vmem>>, vector<32x128xf32>,
    %cst_7 = arith.constant dense<0.000000e+00> : vector<32xf32>
    %7 = vector.multi_reduction <add>, %5, %cst_7 [1] : vector<32x128xf32> to vector<32xf32>
    %8 = vector.shape_cast %7 : vector<32xf32> to vector<32x1xf32>
    %cst_8 = arith.constant 1.280000e+02 : f32
    %9 = vector.broadcast %cst_8 : f32 to vector<32x1xf32>
    %10 = arith.divf %8, %9 : vector<32x1xf32>
    %11 = vector.broadcast %10 : vector<32x1xf32> to vector<32x128xf32>
    %12 = arith.subf %5, %11 : vector<32x128xf32>
    %13 = arith.mulf %12, %12 : vector<32x128xf32>
    %cst_9 = arith.constant dense<0.000000e+00> : vector<32xf32>
    %14 = vector.multi_reduction <add>, %13, %cst_9 [1] : vector<32x128xf32> to vector<32xf32>
    %15 = vector.shape_cast %14 : vector<32xf32> to vector<32x1xf32>
    %16 = vector.shape_cast %10 : vector<32x1xf32> to vector<1x32x1xf32>
    %c0_10 = arith.constant 0 : index
    %c0_11 = arith.constant 0 : index
    %c0_12 = arith.constant 0 : index
    %17 = vector.load %arg5[%c0_10, %c0_11, %c0_12] : memref<1x32x1xf32, #tpu.memory_space<vmem>>, vector<1x32x1xf32>
    tpu.vector_store %arg5[%c0_10, %c0_11, %c0_12], %16 {strides = array<i32>} : memref<1x32x1xf32, #tpu.memory_space<vmem>>, vector<1x32x1xf32>,
    %18 = vector.shape_cast %15 : vector<32x1xf32> to vector<1x32x1xf32>
    %c0_13 = arith.constant 0 : index
    %c0_14 = arith.constant 0 : index
    %c0_15 = arith.constant 0 : index
    %19 = vector.load %arg6[%c0_13, %c0_14, %c0_15] : memref<1x32x1xf32, #tpu.memory_space<vmem>>, vector<1x32x1xf32>
    tpu.vector_store %arg6[%c0_13, %c0_14, %c0_15], %18 {strides = array<i32>} : memref<1x32x1xf32, #tpu.memory_space<vmem>>, vector<1x32x1xf32>,
    return
  }
  func.func @transform_0(%arg0: i32) -> (i32, i32) {
    %c0_i32 = arith.constant 0 : i32
    %c0_i32_0 = arith.constant 0 : i32
    return %c0_i32, %arg0 : i32, i32
  }
  func.func @transform_1(%arg0: i32) -> (i32, i32) {
    %c0_i32 = arith.constant 0 : i32
    %c0_i32_0 = arith.constant 0 : i32
    %c0_i32_1 = arith.constant 0 : i32
    return %c0_i32, %c0_i32_0 : i32, i32
  }
  func.func @transform_2(%arg0: i32) -> (i32, i32) {
    %c0_i32 = arith.constant 0 : i32
    %c0_i32_0 = arith.constant 0 : i32
    %c0_i32_1 = arith.constant 0 : i32
    return %c0_i32, %c0_i32_0 : i32, i32
  }
  func.func @transform_3(%arg0: i32) -> (i32, i32) {
    %c0_i32 = arith.constant 0 : i32
    %c0_i32_0 = arith.constant 0 : i32
    return %c0_i32, %arg0 : i32, i32
  }
  func.func @transform_4(%arg0: i32) -> (i32, i32, i32) {
    %c0_i32 = arith.constant 0 : i32
    %c0_i32_0 = arith.constant 0 : i32
    %c0_i32_1 = arith.constant 0 : i32
    return %arg0, %c0_i32, %c0_i32_0 : i32, i32, i32
  }
  func.func @transform_5(%arg0: i32) -> (i32, i32, i32) {
    %c0_i32 = arith.constant 0 : i32
    %c0_i32_0 = arith.constant 0 : i32
    %c0_i32_1 = arith.constant 0 : i32
    return %arg0, %c0_i32, %c0_i32_0 : i32, i32, i32
  }
}

module attributes {stable_mosaic.version = 11 : i64} {
  func.func @_bn_relu_kernel(%arg0: i32, %arg1: memref<32x128xf32, #tpu.memory_space<vmem>>, %arg2: memref<32x1xf32, #tpu.memory_space<vmem>>, %arg3: memref<32x1xf32, #tpu.memory_space<vmem>>, %arg4: memref<32x128xf32, #tpu.memory_space<vmem>>) attributes {dimension_semantics = [#tpu.dimension_semantics<parallel>], iteration_bounds = array<i64: 4>, scalar_prefetch = 0 : i64, scratch_operands = 0 : i64, tpu.core_type = #tpu.core_type<tc>, window_params = [{transform_indices = @transform_0, window_bounds = array<i64: 32, 128>}, {pipeline_mode = #tpu.pipeline_mode<synchronous>, transform_indices = @transform_1, window_bounds = array<i64: 32, 1>}, {pipeline_mode = #tpu.pipeline_mode<synchronous>, transform_indices = @transform_2, window_bounds = array<i64: 32, 1>}, {transform_indices = @transform_3, window_bounds = array<i64: 32, 128>}]} {
    %c0 = arith.constant 0 : index
    %c0_0 = arith.constant 0 : index
    %0 = vector.load %arg1[%c0, %c0_0] : memref<32x128xf32, #tpu.memory_space<vmem>>, vector<32x128xf32>
    %c0_1 = arith.constant 0 : index
    %c0_2 = arith.constant 0 : index
    %1 = vector.load %arg2[%c0_1, %c0_2] : memref<32x1xf32, #tpu.memory_space<vmem>>, vector<32x1xf32>
    %2 = vector.broadcast %1 : vector<32x1xf32> to vector<32x128xf32>
    %3 = arith.mulf %0, %2 : vector<32x128xf32>
    %c0_3 = arith.constant 0 : index
    %c0_4 = arith.constant 0 : index
    %4 = vector.load %arg3[%c0_3, %c0_4] : memref<32x1xf32, #tpu.memory_space<vmem>>, vector<32x1xf32>
    %5 = vector.broadcast %4 : vector<32x1xf32> to vector<32x128xf32>
    %6 = arith.addf %3, %5 : vector<32x128xf32>
    %cst = arith.constant 0.000000e+00 : f32
    %7 = vector.broadcast %cst : f32 to vector<32x128xf32>
    %8 = arith.maximumf %6, %7 : vector<32x128xf32>
    %c0_5 = arith.constant 0 : index
    %c0_6 = arith.constant 0 : index
    %9 = vector.load %arg4[%c0_5, %c0_6] : memref<32x128xf32, #tpu.memory_space<vmem>>, vector<32x128xf32>
    tpu.vector_store %arg4[%c0_5, %c0_6], %8 {strides = array<i32>} : memref<32x128xf32, #tpu.memory_space<vmem>>, vector<32x128xf32>,
    return
  }
  func.func @transform_0(%arg0: i32) -> (i32, i32) {
    %c0_i32 = arith.constant 0 : i32
    %c0_i32_0 = arith.constant 0 : i32
    return %c0_i32, %arg0 : i32, i32
  }
  func.func @transform_1(%arg0: i32) -> (i32, i32) {
    %c0_i32 = arith.constant 0 : i32
    %c0_i32_0 = arith.constant 0 : i32
    %c0_i32_1 = arith.constant 0 : i32
    return %c0_i32, %c0_i32_0 : i32, i32
  }
  func.func @transform_2(%arg0: i32) -> (i32, i32) {
    %c0_i32 = arith.constant 0 : i32
    %c0_i32_0 = arith.constant 0 : i32
    %c0_i32_1 = arith.constant 0 : i32
    return %c0_i32, %c0_i32_0 : i32, i32
  }
  func.func @transform_3(%arg0: i32) -> (i32, i32) {
    %c0_i32 = arith.constant 0 : i32
    %c0_i32_0 = arith.constant 0 : i32
    return %c0_i32, %arg0 : i32, i32
  }
}

</mosaic_0001>

<bundles_post_ra>
// kernel: tile.18
= control target key start
LH: loop header
LB: loop body
LE: loop exit
PB: predicated region body
PF: predicated region fallthrough
CT: control target
= control target key end

     0   :  { %s22_s0 = inlined_call_operand.vmem [shape: f32[8], index: 0, kind: input, shape index: {}]   ;;  %s23_s1 = inlined_call_operand.vmem [shape: f32[4,8], index: 1, kind: output, shape index: {}]  }
   0x1   :  { %v4_v0 = vld [vmem:[%s22_s0] ss:$0 sm:$0xff] }
   0x2   :  { %5 = vst [vmem:[%s23_s1] sm:$0xf] %v4_v0 }

// kernel: tile.0
= control target key start
LH: loop header
LB: loop body
LE: loop exit
PB: predicated region body
PF: predicated region fallthrough
CT: control target
= control target key end

     0   :  { %s67_s8 = smov 125   ;;  %vm8_vm0 = vcmask 7168   ;;  %s68_s11 = smov 126   ;;  %s118_s0 = inlined_call_operand.vmem [shape: f32[4,8], index: 0, kind: input, shape index: {}]   ;;  %s119_s1 = inlined_call_operand.vmem [shape: f32[32,1], index: 1, kind: output, shape index: {}]  }
   0x1   :  { %v5_v0 = vld [vmem:[%s118_s0] sm:$0xf]  ;;  %s66_s0 = smov 127   ;;  %s69_s12 = smov 124  }
   0x2   :  { %6 = vst [vmem:[#allocation0] sm:$0xf] %v5_v0  ;;  %s70_s13 = smov 123   ;;  %s71_s14 = smov 122  }
   0x3   :  { %s72_s15 = smov 121  }
   0x9   :  { %v10_v1 = vld [vmem:[#allocation0] sm:$0xf]  }
   0xa   :  { %v22_v2 = vld [vmem:[#allocation0] sm:$0xf]   ;;  %11 = vrot.lane.b32.xlu0 %v10_v1, %s66_s0 }
   0xb   :  { %23 = vrot.lane.b32.xlu1 %v22_v2, %s67_s8  ;;  %v16_v3 = vld [vmem:[#allocation0] sm:$0xf]  }
   0xc   :  { %v28_v4 = vld [vmem:[#allocation0] sm:$0xf]  }
   0xd   :  { %v7_v5 = vld [vmem:[#allocation0] sm:$0xf]  }
   0xe   :  { %9 = vst.msk [vmem:[%s119_s1] ss:$8 sm:$0xf] %vm8_vm0, %v7_v5   ;;  %17 = vrot.lane.b32.xlu0 %v16_v3, %s68_s11  ;;  %v34_v6 = vld [vmem:[#allocation0] sm:$0xf]  }
   0xf   :  { %29 = vrot.lane.b32.xlu1 %v28_v4, %s69_s12  ;;  %v40_v7 = vld [vmem:[#allocation0] sm:$0xf]  }
  0x10   :  { %v46_v8 = vld [vmem:[#allocation0] sm:$0xf]  }
  0x12   :  { %35 = vrot.lane.b32.xlu0 %v34_v6, %s70_s13 }
  0x13   :  { %41 = vrot.lane.b32.xlu1 %v40_v7, %s71_s14 }
  0x16   :  { %47 = vrot.lane.b32.xlu0 %v46_v8, %s72_s15 }
  0x7c   :  { %v12_v9 = vpop.permute.xlu0 %11  }
  0x7d   :  { %v24_v10 = vpop.permute.xlu1 %23   ;;  %52 = vst.msk [vmem:[%s119_s1 + $0x1] ss:$8 sm:$0xf] %vm8_vm0, %v12_v9  }
  0x7e   :  { %54 = vst.msk [vmem:[%s119_s1 + $0x3] ss:$8 sm:$0xf] %vm8_vm0, %v24_v10  }
  0x80   :  { %v18_v11 = vpop.permute.xlu0 %17  }
  0x81   :  { %v30_v12 = vpop.permute.xlu1 %29   ;;  %53 = vst.msk [vmem:[%s119_s1 + $0x2] ss:$8 sm:$0xf] %vm8_vm0, %v18_v11  }
  0x82   :  { %55 = vst.msk [vmem:[%s119_s1 + $0x4] ss:$8 sm:$0xf] %vm8_vm0, %v30_v12  }
  0x84   :  { %v36_v13 = vpop.permute.xlu0 %35  }
  0x85   :  { %v42_v14 = vpop.permute.xlu1 %41   ;;  %56 = vst.msk [vmem:[%s119_s1 + $0x5] ss:$8 sm:$0xf] %vm8_vm0, %v36_v13  }
  0x86   :  { %57 = vst.msk [vmem:[%s119_s1 + $0x6] ss:$8 sm:$0xf] %vm8_vm0, %v42_v14  }
  0x88   :  { %v48_v15 = vpop.permute.xlu0 %47  }
  0x89   :  { %58 = vst.msk [vmem:[%s119_s1 + $0x7] ss:$8 sm:$0xf] %vm8_vm0, %v48_v15  }

// kernel: upsampler_block.3
= control target key start
LH: loop header
LB: loop body
LE: loop exit
PB: predicated region body
PF: predicated region fallthrough
CT: control target
= control target key end

     0   :  { %s475_s12 = smov 0   ;;  %s477_s13 = smov 0   ;;  %s559_s0 = inlined_call_operand.vmem [shape: f32[32,512], index: 0, kind: input, shape index: {}]   ;;  %s560_s1 = inlined_call_operand.vmem [shape: f32[32,1], index: 1, kind: input, shape index: {}]   ;;  %s561_s2 = inlined_call_operand.vmem [shape: f32[32,1], index: 2, kind: input, shape index: {}]   ;;  %s562_s3 = inlined_call_operand.vmem [shape: f32[32,512], index: 3, kind: output, shape index: {}]  }
   0x1   :  { %s479_s14 = smov 0  }
   0x2 LB: > { %s390_s15 = sadd.s32 4294967295, %s452_s14   ;;  %s492_s16 = sadd.s32 1, %s452_s14   ;;  %s452_s14 = sphi %s479_s14, %s566_s14   ;;  %s448_s13 = sphi %s477_s13, %s565_s13   ;;  %s444_s12 = sphi %s475_s12, %s564_s12  }
   0x3   : > { %s17_s17 = ssub.s32 %s452_s14, %s492_s16  ;;  %s20_s18 = sadd.s32 1, %s448_s13 }
   0x4   : > { %p18_p0 = scmp.eq.s32.totalorder %s17_s17, 0  ;;  %p27_p1 = scmp.ne.s32.totalorder %s448_s13, %s444_s12 }
   0x5   : > { %p28_p2 = scmp.eq.s32.totalorder %s452_s14, 0  ;;  %p99_p3 = scmp.eq.s32.totalorder %s390_s15, 3 }
   0x6   : > { %s503_s19 = scalar_select %p18_p0, %s448_s13, %s20_s18  }
   0x7   : > { %p29_p4 = por %p28_p2, %p27_p1  ;;  %p505_p5 = por %p99_p3, %p27_p1 }
   0x8   : > { %p393_p6 = scmp.ge.s32.totalorder %s452_s14, 4 }
   0xa   : > { %127 = sbr.rel (%p393_p6) target bundleno = 23 (0x17), region = 24 }
   0xf   : > { %130 = sbr.rel (!%p29_p4) target bundleno = 23 (0x17), region = 28  ;;  %s132_s21 = sand.u32 (%p29_p4), 1, %s448_s13  }
  0x10   : > { %s395_s22 = sshll.u32 (%p29_p4), %s452_s14, 3  ;;  %s394_s23 = sshll.u32 (%p29_p4), %s132_s21, 5 }
  0x11   : > { %s136_s26 = scalar_lea.vmem (%p29_p4), %s559_s0, %s395_s22  ;;  %s134_s27 = scalar_lea.vmem (%p29_p4), [#allocation2], %s394_s23 }
  0x12   : > { %v171_v0 = vld [vmem:[%s136_s26] sm:$0xff] (%p29_p4) }
  0x13   : > { %v173_v1 = vld [vmem:[%s136_s26 + $0x20] sm:$0xff] (%p29_p4)  ;;  %172 = vst [vmem:[%s134_s27] sm:$0xff] (%p29_p4), %v171_v0 }
  0x14   : > { %v175_v2 = vld [vmem:[%s136_s26 + $0x40] sm:$0xff]  ;;  %174 = vst [vmem:[%s134_s27 + $0x8] sm:$0xff] %v173_v1 }
  0x15   : > { %176 = vst [vmem:[%s134_s27 + $0x10] sm:$0xff] %v175_v2  ;;  %v177_v3 = vld [vmem:[%s136_s26 + $0x60] sm:$0xff] }
  0x16   : > { %178 = vst [vmem:[%s134_s27 + $0x18] sm:$0xff] %v177_v3 }
  0x17 PF: > { %p396_p7 = scmp.ge.s32.totalorder %s452_s14, 1  ;;  %p183_p8 = scmp.lt.s32.totalorder %s452_s14, 5 }
  0x19   : > { %p184_p9 = pnand %p396_p7, %p183_p8 }
  0x1a   : > { %s190_s24 = sand.u32 (!%p184_p9), 1, %s444_s12  }
  0x1b   : > { %187 = sbr.rel (%p184_p9) target bundleno = 183 (0xb7), region = 66  ;;  %s397_s25 = sshll.u32 (!%p184_p9), %s190_s24, 5 }
  0x1c   : > { %s192_s26 = scalar_lea.vmem (!%p184_p9), [#allocation2], %s397_s25  ;;  %s211_s12 = scalar_lea.vmem (!%p184_p9), [#allocation3], %s397_s25 }
  0x20   : > { %v218_v4 = vld [vmem:[%s560_s1 + $0x10] sm:$0xff]  ;;  %v216_v5 = vld [vmem:[%s560_s1] sm:$0xff]  ;;  %v454_v6 = vmov 0   ;;  %v219_v7 = vld [vmem:[%s560_s1 + $0x18] sm:$0xff]  ;;  %s400_s27 = sshll.u32 (%p505_p5), %s390_s15, 3 }
  0x21   : > { %429 = vset.pattern.permute.xlu1 %v454_v6  ;;  %428 = vset.pattern.permute.xlu0 %v454_v6  ;;  %v217_v8 = vld [vmem:[%s560_s1 + $0x8] sm:$0xff]  ;;  %v244_v10 = vld [vmem:[%s561_s2] sm:$0xff]  ;;  %v247_v11 = vld [vmem:[%s561_s2 + $0x18] sm:$0xff]  ;;  %s288_s30 = scalar_lea.vmem (%p505_p5), %s562_s3, %s400_s27 }
  0x22   : > { %232 = vperm.xlu1 %429, %v218_v4   ;;  %222 = vperm.xlu0 %428, %v216_v5   ;;  %v245_v9 = vld [vmem:[%s561_s2 + $0x8] sm:$0xff]  ;;  %v246_v12 = vld [vmem:[%s561_s2 + $0x10] sm:$0xff]  ;;  %v212_v15 = vld [vmem:[%s192_s26] sm:$0xff] }
  0x23   : > { %v213_v18 = vld [vmem:[%s192_s26 + $0x8] sm:$0xff]  ;;  %v214_v21 = vld [vmem:[%s192_s26 + $0x10] sm:$0xff]  ;;  %v215_v22 = vld [vmem:[%s192_s26 + $0x18] sm:$0xff] }
  0x26   : > { %237 = vperm.xlu1 %429, %v219_v7   ;;  %227 = vperm.xlu0 %428, %v217_v8  }
  0x2a   : > { %255 = vperm.xlu1 %429, %v245_v9   ;;  %250 = vperm.xlu0 %428, %v244_v10  }
  0x2e   : > { %265 = vperm.xlu1 %429, %v247_v11   ;;  %260 = vperm.xlu0 %428, %v246_v12  }
  0x9d   : > { %v233_v13 = vpop.permute.xlu1 %232  ;;  %v223_v14 = vpop.permute.xlu0 %222 }
  0x9e   : > { %v240_v19 = vmul.f32 %v223_v14, %v212_v15  ;;  %v242_v27 = vmul.f32 %v233_v13, %v214_v21 }
  0xa1   : > { %v238_v16 = vpop.permute.xlu1 %237  ;;  %v228_v17 = vpop.permute.xlu0 %227 }
  0xa2   : > { %v241_v20 = vmul.f32 %v228_v17, %v213_v18  ;;  %v243_v28 = vmul.f32 %v238_v16, %v215_v22 }
  0xa5   : > { %v256_v23 = vpop.permute.xlu1 %255  ;;  %v251_v24 = vpop.permute.xlu0 %250 }
  0xa6   : > { %v269_v25 = vadd.f32 %v256_v23, %v241_v20  ;;  %v268_v26 = vadd.f32 %v251_v24, %v240_v19 }
  0xa8   : > { %v273_v29 = vmax.f32 %v269_v25, 0.0  ;;  %v272_v30 = vmax.f32 %v268_v26, 0.0 }
  0xa9   : > { %v266_v31 = vpop.permute.xlu1 %265  ;;  %v261_v32 = vpop.permute.xlu0 %260 }
  0xaa   : > { %277 = vst [vmem:[%s211_s12 + $0x8] sm:$0xff] %v273_v29  ;;  %276 = vst [vmem:[%s211_s12] sm:$0xff] %v272_v30  ;;  %v271_v33 = vadd.f32 %v266_v31, %v243_v28  ;;  %v270_v34 = vadd.f32 %v261_v32, %v242_v27  ;;  %286 = sbr.rel (!%p505_p5) target bundleno = 183 (0xb7), region = 74 }
  0xac   : > { %v275_v35 = vmax.f32 %v271_v33, 0.0  ;;  %v274_v36 = vmax.f32 %v270_v34, 0.0 }
  0xae   : > { %279 = vst [vmem:[%s211_s12 + $0x18] sm:$0xff] %v275_v35  ;;  %278 = vst [vmem:[%s211_s12 + $0x10] sm:$0xff] %v274_v36 }
  0xb1   : > { %v323_v37 = vld [vmem:[%s211_s12] sm:$0xff]  ;;  %v325_v38 = vld [vmem:[%s211_s12 + $0x8] sm:$0xff] }
  0xb2   : > { %324 = vst [vmem:[%s288_s30] sm:$0xff] %v323_v37  ;;  %326 = vst [vmem:[%s288_s30 + $0x20] sm:$0xff] %v325_v38 }
  0xb5   : > { %v327_v39 = vld [vmem:[%s211_s12 + $0x10] sm:$0xff]  ;;  %v329_v40 = vld [vmem:[%s211_s12 + $0x18] sm:$0xff] }
  0xb6   : > { %328 = vst [vmem:[%s288_s30 + $0x40] sm:$0xff] %v327_v39  ;;  %330 = vst [vmem:[%s288_s30 + $0x60] sm:$0xff] %v329_v40 }
  0xb7 PF: > { %p10_p10 = scmp.ge.s32.totalorder %s492_s16, 6   ;;  %s564_s12 = smov %s448_s13 }
  0xb8   : > { %s565_s13 = smov %s503_s19  ;;  %s566_s14 = smov %s492_s16 }
  0xb9   :  { %12 = sbr.rel (!%p10_p10) target bundleno = 2 (0x2), region = 143 }

// kernel: upsampler_block.2
= control target key start
LH: loop header
LB: loop body
LE: loop exit
PB: predicated region body
PF: predicated region fallthrough
CT: control target
= control target key end

     0   :  { %s754_s18 = smov 0   ;;  %s756_s19 = smov 0   ;;  %s865_s0 = inlined_call_operand.vmem [shape: f32[16,512], index: 0, kind: input, shape index: {}]   ;;  %s866_s1 = inlined_call_operand.vmem [shape: f32[32,16], index: 1, kind: input, shape index: {}]   ;;  %s867_s2 = inlined_call_operand.vmem [shape: f32[32,1], index: 2, kind: input, shape index: {}]   ;;  %s868_s3 = inlined_call_operand.vmem [shape: f32[32,512], index: 3, kind: output, shape index: {0}]   ;;  %s869_s4 = inlined_call_operand.vmem [shape: f32[4,32,1], index: 4, kind: output, shape index: {1}]   ;;  %s870_s5 = inlined_call_operand.vmem [shape: f32[4,32,1], index: 5, kind: output, shape index: {2}]  }
   0x1   :  { %s758_s20 = smov 0  }
   0x2 LB: > { %s767_s21 = sadd.s32 4294967295, %s721_s20   ;;  %s769_s22 = sadd.s32 1, %s721_s20   ;;  %s721_s20 = sphi %s758_s20, %s874_s20   ;;  %s717_s19 = sphi %s756_s19, %s873_s19   ;;  %s713_s18 = sphi %s754_s18, %s872_s18  }
   0x3   : > { %s20_s23 = ssub.s32 %s721_s20, %s769_s22  ;;  %s23_s24 = sadd.s32 1, %s717_s19 }
   0x4   : > { %p21_p0 = scmp.eq.s32.totalorder %s20_s23, 0  ;;  %p30_p1 = scmp.ne.s32.totalorder %s717_s19, %s713_s18 }
   0x5   : > { %p31_p2 = scmp.eq.s32.totalorder %s721_s20, 0  ;;  %p102_p3 = scmp.eq.s32.totalorder %s767_s21, 3 }
   0x6   : > { %s777_s25 = scalar_select %p21_p0, %s717_s19, %s23_s24  }
   0x7   : > { %p32_p4 = por %p31_p2, %p30_p1  ;;  %p779_p5 = por %p102_p3, %p30_p1 }
   0x8   : > { %p632_p6 = scmp.ge.s32.totalorder %s721_s20, 4 }
   0xa   : > { %182 = sbr.rel (%p632_p6) target bundleno = 21 (0x15), region = 24 }
   0xf   : > { %185 = sbr.rel (!%p32_p4) target bundleno = 21 (0x15), region = 28  ;;  %s187_s27 = sand.u32 (%p32_p4), 1, %s717_s19  }
  0x10   : > { %s634_s28 = sshll.u32 (%p32_p4), %s721_s20, 3  ;;  %s633_s29 = sshll.u32 (%p32_p4), %s187_s27, 4 }
  0x11   : > { %s191_s7 = scalar_lea.vmem (%p32_p4), %s865_s0, %s634_s28  ;;  %s189_s8 = scalar_lea.vmem (%p32_p4), [#allocation2], %s633_s29 }
  0x12   : > { %v222_v0 = vld [vmem:[%s191_s7] sm:$0xff] (%p32_p4) }
  0x13   : > { %v224_v1 = vld [vmem:[%s191_s7 + $0x20] sm:$0xff] (%p32_p4)  ;;  %223 = vst [vmem:[%s189_s8] sm:$0xff] (%p32_p4), %v222_v0 }
  0x14   : > { %225 = vst [vmem:[%s189_s8 + $0x8] sm:$0xff] %v224_v1 }
  0x15 PF: > { %p635_p7 = scmp.ge.s32.totalorder %s721_s20, 1  ;;  %p230_p8 = scmp.lt.s32.totalorder %s721_s20, 5 }
  0x17   : > { %p231_p9 = pnand %p635_p7, %p230_p8 }
  0x18   : > { %s237_s9 = sand.u32 (!%p231_p9), 1, %s713_s18   ;;  %p273_p10 = scmp.lt.s32.totalorder (!%p231_p9), %s767_s21, 3 }
  0x19   : > { %234 = sbr.rel (%p231_p9) target bundleno = 526 (0x20e), region = 66  ;;  %s636_s14 = sshll.u32 (!%p231_p9), %s237_s9, 4 }
  0x1a   : > { %s239_s23 = scalar_lea.vmem (!%p231_p9), [#allocation2], %s636_s14  ;;  %s637_s10 = sshll.u32 (!%p231_p9), %s237_s9, 5 }
  0x1b   : > { %s820_s11 = scalar_lea.vmem (!%p231_p9), [#allocation3], %s637_s10 }
  0x1e   : > { %v283_v2 = vld [vmem:[%s866_s1] sm:$0xff]  ;;  %vm313_vm0 = vcmask 130048   ;;  %v285_v3 = vld [vmem:[%s866_s1 + $0x10] sm:$0xff]  ;;  %v723_v6 = vmov 0   ;;  %v288_v7 = vld [vmem:[%s239_s23 + $0x8] sm:$0xff]  ;;  %s828_s18 = scalar_select %p273_p10, %s767_s21, 3 }
  0x1f   : > { %662 = vmatprep.mubr.msk.f32.mxu0 %vm313_vm0, %v283_v2  ;;  %665 = vmatprep.mubr.msk.f32.mxu1 %vm313_vm0, %v285_v3  ;;  %v289_v4 = vld [vmem:[%s867_s2] sm:$0xff]  ;;  %v291_v5 = vld [vmem:[%s867_s2 + $0x10] sm:$0xff]  ;;  %v284_v9 = vld [vmem:[%s866_s1 + $0x8] sm:$0xff]  ;;  %vm444_vm1 = vcmask 7168   ;;  %s647_s20 = sshll.u32 (%p779_p5), %s767_s21, 3 }
  0x20   : > { %697 = vset.pattern.permute.xlu0 %v723_v6  ;;  %698 = vset.pattern.permute.xlu1 %v723_v6  ;;  %v287_v8 = vld [vmem:[%s239_s23] sm:$0xff]  ;;  %v286_v10 = vld [vmem:[%s866_s1 + $0x18] sm:$0xff]  ;;  %v290_v11 = vld [vmem:[%s867_s2 + $0x8] sm:$0xff]  ;;  %s650_s9 = sshll.u32 %s828_s18, 5  ;;  %s471_s27 = scalar_lea.vmem (%p779_p5), %s868_s3, %s647_s20 }
  0x21   : > { %295 = vperm.xlu0 %697, %v289_v4   ;;  %305 = vperm.xlu1 %698, %v291_v5   ;;  %v292_v12 = vld [vmem:[%s867_s2 + $0x18] sm:$0xff]  ;;  %s277_s14 = scalar_lea.vmem %s869_s4, %s650_s9  ;;  %s282_s17 = scalar_lea.vmem %s870_s5, %s650_s9 }
  0x22   : > { %658 = vmatprep.subr.mxu0 %v288_v7  ;;  %668 = vmatprep.subr.mxu1 %v288_v7 }
  0x23   : > { %659 = vmatpush3.msra.mxu0 %v288_v7  ;;  %670 = vmatpush3.msra.mxu1 %v288_v7 }
  0x24   : > { %660 = vmatprep.subr.mxu0 %v287_v8  ;;  %669 = vmatprep.subr.mxu1 %v287_v8 }
  0x25   : > { %661 = vmatpush3.msra.mxu0 %v287_v8  ;;  %671 = vmatpush3.msra.mxu1 %v287_v8 }
  0x26   : > { %663 = vmatmul.mubr.msk.f32.vlgmr.msra.gmra.mxu0 %vm313_vm0, %v284_v9  ;;  %666 = vmatmul.mubr.msk.f32.vlgmr.msra.gmra.mxu1 %vm313_vm0, %v286_v10 }
  0x27   : > { %300 = vperm.xlu0 %697, %v290_v11   ;;  %310 = vperm.xlu1 %698, %v292_v12  }
  0x9c   : > { %v296_v13 = vpop.permute.xlu0 %295  ;;  %v306_v14 = vpop.permute.xlu1 %305 }
  0xa2   : > { %v301_v15 = vpop.permute.xlu0 %300  ;;  %v311_v16 = vpop.permute.xlu1 %310 }
  0xe6   : > { %v664_v17 = vpop.f32.mrf.mxu0  ;;  %v667_v18 = vpop.f32.mrf.mxu1 }
  0xe7   : > { %v398_v19 = vadd.f32 %v664_v17, %v301_v15  ;;  %v408_v20 = vadd.f32 %v667_v18, %v311_v16 }
  0xe8   : > { %v392_v21 = vpop.f32.mrf.mxu0  ;;  %v402_v22 = vpop.f32.mrf.mxu1 }
  0xe9   : > { %412 = vst [vmem:[%s820_s11 + $0x8] sm:$0xff] %v398_v19  ;;  %v393_v23 = vadd.f32 %v392_v21, %v296_v13  ;;  %417 = vadd.xlane.f32.xlu1 %v398_v19  ;;  %414 = vst [vmem:[%s820_s11 + $0x18] sm:$0xff] %v408_v20  ;;  %v403_v24 = vadd.f32 %v402_v22, %v306_v14 }
  0xeb   : > { %411 = vst [vmem:[%s820_s11] sm:$0xff] %v393_v23  ;;  %413 = vst [vmem:[%s820_s11 + $0x10] sm:$0xff] %v403_v24  ;;  %415 = vadd.xlane.f32.xlu0 %v393_v23 }
  0xef   : > { %419 = vadd.xlane.f32.xlu0 %v403_v24 }
  0xf0   : > { %v508_v46 = vld [vmem:[%s820_s11 + $0x8] sm:$0xff] (%p779_p5)  ;;  %v512_v48 = vld [vmem:[%s820_s11 + $0x18] sm:$0xff] (%p779_p5) }
  0xf1   : > { %509 = vst [vmem:[%s471_s27 + $0x20] sm:$0xff] (%p779_p5), %v508_v46  ;;  %513 = vst [vmem:[%s471_s27 + $0x60] sm:$0xff] (%p779_p5), %v512_v48 }
  0xf2   : > { %v506_v45 = vld [vmem:[%s820_s11] sm:$0xff] (%p779_p5)  ;;  %v510_v47 = vld [vmem:[%s820_s11 + $0x10] sm:$0xff] (%p779_p5) }
  0xf3   : > { %421 = vadd.xlane.f32.xlu0 %v408_v20  ;;  %507 = vst [vmem:[%s471_s27] sm:$0xff] (%p779_p5), %v506_v45  ;;  %511 = vst [vmem:[%s471_s27 + $0x40] sm:$0xff] (%p779_p5), %v510_v47 }
 0x172   : > { %v418_v25 = vpop.xlane.xlu1 %417 }
 0x173   : > { %v425_v26 = vmul.f32 0.0078125, %v418_v25 }
 0x174   : > { %v416_v27 = vpop.xlane.xlu0 %415 }
 0x175   : > { %446 = vst.msk [vmem:[%s277_s14 + $0x8] sm:$0xff] %vm444_vm1, %v425_v26  ;;  %v424_v28 = vmul.f32 0.0078125, %v416_v27  ;;  %v429_v29 = vsub.f32 %v398_v19, %v425_v26 }
 0x177   : > { %445 = vst.msk [vmem:[%s277_s14] sm:$0xff] %vm444_vm1, %v424_v28  ;;  %v433_v30 = vmul.f32 %v429_v29, %v429_v29  ;;  %v428_v31 = vsub.f32 %v393_v23, %v424_v28 }
 0x178   : > { %v420_v32 = vpop.xlane.xlu0 %419 }
 0x179   : > { %v426_v33 = vmul.f32 0.0078125, %v420_v32  ;;  %438 = vadd.xlane.f32.xlu0 %v433_v30  ;;  %v432_v34 = vmul.f32 %v428_v31, %v428_v31 }
 0x17b   : > { %447 = vst.msk [vmem:[%s277_s14 + $0x10] sm:$0xff] %vm444_vm1, %v426_v33  ;;  %436 = vadd.xlane.f32.xlu1 %v432_v34  ;;  %v430_v35 = vsub.f32 %v403_v24, %v426_v33 }
 0x17c   : > { %v422_v36 = vpop.xlane.xlu0 %421 }
 0x17d   : > { %v427_v37 = vmul.f32 0.0078125, %v422_v36  ;;  %v434_v38 = vmul.f32 %v430_v35, %v430_v35 }
 0x17f   : > { %448 = vst.msk [vmem:[%s277_s14 + $0x18] sm:$0xff] %vm444_vm1, %v427_v37  ;;  %440 = vadd.xlane.f32.xlu1 %v434_v38  ;;  %v431_v39 = vsub.f32 %v408_v20, %v427_v37 }
 0x181   : > { %v435_v40 = vmul.f32 %v431_v39, %v431_v39 }
 0x183   : > { %442 = vadd.xlane.f32.xlu0 %v435_v40 }
 0x202   : > { %v439_v41 = vpop.xlane.xlu0 %438 }
 0x203   : > { %450 = vst.msk [vmem:[%s282_s17 + $0x8] sm:$0xff] %vm444_vm1, %v439_v41 }
 0x204   : > { %v437_v42 = vpop.xlane.xlu1 %436 }
 0x205   : > { %449 = vst.msk [vmem:[%s282_s17] sm:$0xff] %vm444_vm1, %v437_v42 }
 0x208   : > { %v441_v43 = vpop.xlane.xlu1 %440 }
 0x209   : > { %451 = vst.msk [vmem:[%s282_s17 + $0x10] sm:$0xff] %vm444_vm1, %v441_v43  ;;  %469 = sbr.rel (!%p779_p5) target bundleno = 526 (0x20e), region = 74 }
 0x20c   : > { %v443_v44 = vpop.xlane.xlu0 %442 }
 0x20d   : > { %452 = vst.msk [vmem:[%s282_s17 + $0x18] sm:$0xff] %vm444_vm1, %v443_v44 }
 0x20e PF: > { %p13_p11 = scmp.ge.s32.totalorder %s769_s22, 6   ;;  %s872_s18 = smov %s717_s19 }
 0x20f   : > { %s873_s19 = smov %s777_s25  ;;  %s874_s20 = smov %s769_s22 }
 0x210   :  { %15 = sbr.rel (!%p13_p11) target bundleno = 2 (0x2), region = 167 }

</bundles_post_ra>
